<compile_context>
chip_gen: v6e
topology: v6e:2x2x1
jax: 0.10.0
libtpu: 0.0.40
codegen_flags: <defaults>
</compile_context>

<pallas_src>
import functools
import math

import jax
import jax.numpy as jnp
import numpy as np
from jax import lax
from jax.experimental import pallas as pl
from jax.experimental.pallas import tpu as pltpu


MATMUL_DTYPE = jnp.bfloat16   # MXU operand dtype (accumulation stays f32)
GATE_DTYPE = jnp.bfloat16     # storage dtype of the precomputed gates (HBM)
OUT_DTYPE = jnp.bfloat16      # storage dtype of the recurrence outputs (HBM);
                              # the wrapper returns f32 (module-faithful).

B_TILE = 16                   # batch rows per recurrence grid step
T_ALIGN = 16                  # time padded to a multiple of this (bf16 tiles)
MAX_T_CHUNK = 32              # time steps resident / unrolled per grid step


def _round_up(x, m):
    return ((x + m - 1) // m) * m


def _vmem_limit_bytes():
    """~75% of physical VMEM: ~48 MiB on v7x, ~96 MiB on v5e/v6e."""
    try:
        cap = pltpu.get_tpu_info().vmem_capacity_bytes
    except Exception:
        cap = 64 * 1024 * 1024
    return int(min(cap * 3 // 4, 100 * 1024 * 1024))


def _pick_row_tile(rows, kp, gate_cols, vmem_limit):
    """Largest row tile that divides `rows` and fits the VMEM budget; never
    falls back to a single full-extent block (rows is a multiple of 16)."""
    big_vmem = vmem_limit > 64 * 1024 * 1024
    cands = (2048, 1024, 512, 256, 128, 64, 32, 16) if big_vmem else \
            (512, 256, 128, 64, 32, 16)
    # per-row VMEM bytes: x (bf16, 2 bufs) + gates out (bf16, 2 bufs) + f32 acc
    per_row = kp * 2 * 2 + gate_cols * (2 * 2 + 4)
    budget = vmem_limit // 2
    for cand in cands:
        if rows % cand == 0 and cand * per_row <= budget:
            return cand
    return 16 if rows % 16 == 0 else rows


def _pick_k_tile(kp):
    for cand in (512, 256, 128):
        if kp % cand == 0:
            return cand
    return kp


def _pick_time_chunk(tp):
    # out blocks are bf16 => the second-minor block dim must be a multiple of
    # 16 (or the full extent); tp is padded to a multiple of 16, so this
    # always finds a chunk and the projection/recurrence stay pipelined.
    for cand in (MAX_T_CHUNK, 16):
        if tp % cand == 0:
            return cand
    return tp


def _pad_gate_blocks(a, H, Hp):
    """Pad a gate-stacked (3H, ...) array to (3Hp, ...), zero-padding each of
    the r/z/n blocks independently so gate slabs stay lane-aligned."""
    pads = [(0, Hp - H)] + [(0, 0)] * (a.ndim - 1)
    return jnp.concatenate(
        [jnp.pad(a[g * H:(g + 1) * H], pads) for g in range(3)], axis=0)


# ----------------------------- Pallas kernels ------------------------------

def _proj_kernel(x_ref, w_ref, b_ref, o_ref, acc_ref):
    # grid = (num_dir, row_tiles, k_tiles); K reduction is the innermost axis.
    k = pl.program_id(2)

    @pl.when(k == 0)
    def _():
        acc_ref[...] = jnp.zeros_like(acc_ref)

    acc_ref[...] += jnp.dot(x_ref[...], w_ref[...],
                            preferred_element_type=jnp.float32)

    @pl.when(k == pl.num_programs(2) - 1)
    def _():
        # b already contains b_ih + the r/z parts of b_hh (folded once here,
        # not on the serial recurrence path).
        o_ref[...] = (acc_ref[...] + b_ref[...]).astype(o_ref.dtype)


def _gru_recurrence_kernel(*refs, bidirectional, hidden, t_chunk):
    if bidirectional:
        (gates_f_ref, gates_b_ref, whh_f_ref, whh_b_ref,
         bhn_f_ref, bhn_b_ref, len_ref,
         out_f_ref, out_b_ref, hf_scr, hb_scr) = refs
    else:
        (gates_f_ref, whh_f_ref, bhn_f_ref, len_ref,
         out_f_ref, hf_scr) = refs
        gates_b_ref = whh_b_ref = bhn_b_ref = out_b_ref = hb_scr = None

    H = hidden                      # lane-padded hidden size
    TC = t_chunk                    # time steps in this chunk
    Bt = out_f_ref.shape[0]         # batch tile

    c = pl.program_id(1)
    n_chunks = pl.num_programs(1)

    # h_f / h_b live in VMEM scratch across time chunks (and in vregs inside
    # the chunk).  Zero init at the first chunk of every batch tile; the
    # pack/pad masking below relies on this zero init.
    @pl.when(c == 0)
    def _():
        hf_scr[...] = jnp.zeros_like(hf_scr)
        if bidirectional:
            hb_scr[...] = jnp.zeros_like(hb_scr)

    # Hoisted per-chunk constants (JAX does not CSE broadcasts inside loops).
    # TODO(synk): lengths could move to SMEM via scalar prefetch; the VMEM
    # block is tiny and the per-step cost is already a single full-width cmp.
    len_b = jnp.broadcast_to(len_ref[...], (Bt, H))          # (Bt, H) int32
    bhn_f = jnp.broadcast_to(bhn_f_ref[...], (Bt, H))        # (Bt, H) f32
    bhn_b = (jnp.broadcast_to(bhn_b_ref[...], (Bt, H))
             if bidirectional else None)
    t0_f = c * TC                      # global time of local step 0 (fwd)
    t0_b = (n_chunks - 1 - c) * TC     # global time base of the bwd chunk

    # NOTE: w_hh stays a per-step VMEM read; holding (Hp, 3Hp) in vregs would
    # spill for realistic Hp.
    # TODO(synk): pin whh_f/whh_b in MXU weight-staging registers across the
    # chunk (pltpu.matmul_push_rhs / matmul_acc_lhs) once verified on a bundle.
    def cell(gx, h, whh_ref, bhn):
        # gx already contains b_ih + b_hh[r] + b_hh[z]; b_hh[n] must stay
        # inside the r*(...) term (PyTorch GRU semantics), hence `bhn`.
        gh = jnp.dot(h.astype(MATMUL_DTYPE), whh_ref[...],
                     preferred_element_type=jnp.float32)
        r = jax.nn.sigmoid(gx[:, :H] + gh[:, :H])
        z = jax.nn.sigmoid(gx[:, H:2 * H] + gh[:, H:2 * H])
        n = jnp.tanh(gx[:, 2 * H:] + r * (gh[:, 2 * H:] + bhn))
        return (1.0 - z) * n + z * h

    h_f = hf_scr[...]
    h_b = hb_scr[...] if bidirectional else None

    # The chunk body is fully unrolled: static indices (cheapest gate loads /
    # lane-dense stores) and maximal cross-step visibility for the LLO
    # scheduler.  The chunk grid axis bounds VMEM residency and code size.
    for s in range(TC):
        # ---- forward direction: local step s, global time t0_f + s ----
        gx_f = gates_f_ref[s].astype(jnp.float32)
        hf_new = cell(gx_f, h_f, whh_f_ref, bhn_f)
        mask_f = len_b > (t0_f + s)                 # pack/pad masking
        out_f_ref[:, s, :] = jnp.where(mask_f, hf_new, 0.0).astype(out_f_ref.dtype)
        h_f = jnp.where(mask_f, hf_new, h_f)

        # ---- backward direction: local step TC-1-s (interleaved so one
        # direction's MXU matmul overlaps the other's EUP/VPU gate math) ----
        if bidirectional:
            s_b = TC - 1 - s
            gx_b = gates_b_ref[s_b].astype(jnp.float32)
            hb_new = cell(gx_b, h_b, whh_b_ref, bhn_b)
            mask_b = len_b > (t0_b + s_b)
            out_b_ref[:, s_b, :] = jnp.where(mask_b, hb_new, 0.0).astype(out_b_ref.dtype)
            h_b = jnp.where(mask_b, hb_new, h_b)

    hf_scr[...] = h_f
    if bidirectional:
        hb_scr[...] = h_b


# ------------------------------ JAX wrapper --------------------------------

def init_bigru_params(key, input_size, hidden_size, bidirectional):
    """Deterministic init matching PyTorch GRU parameter shapes."""
    num_dir = 2 if bidirectional else 1
    bound = 1.0 / math.sqrt(hidden_size)
    keys = jax.random.split(key, 4 * num_dir)

    def u(k, shape):
        return jax.random.uniform(k, shape, jnp.float32, -bound, bound)

    params = []
    for d in range(num_dir):
        params.append(dict(
            w_ih=u(keys[4 * d + 0], (3 * hidden_size, input_size)),
            w_hh=u(keys[4 * d + 1], (3 * hidden_size, hidden_size)),
            b_ih=u(keys[4 * d + 2], (3 * hidden_size,)),
            b_hh=u(keys[4 * d + 3], (3 * hidden_size,)),
        ))
    return params


def bigru_forward(x, lengths, params, hidden_size, bidirectional=True):
    B, T, In = x.shape
    H = hidden_size
    num_dir = 2 if bidirectional else 1

    Hp = _round_up(H, 128)            # lane-aligned gate slabs
    Bp = _round_up(B, B_TILE)         # batch padded to the batch tile
    Tp = _round_up(T, T_ALIGN)        # time padded (bf16-friendly chunking)
    Kp = _round_up(In, 128)           # MXU-friendly K (input features)
    vmem_limit = _vmem_limit_bytes()

    # ---------- per-direction parameter prep (padded, b_hh r/z folded) ------
    w_cols, b_cols, whh_list, bhn_list = [], [], [], []
    for d in range(num_dir):
        p = params[d]
        w_ih = _pad_gate_blocks(p["w_ih"].astype(jnp.float32), H, Hp)   # (3Hp, In)
        w_hh = _pad_gate_blocks(p["w_hh"].astype(jnp.float32), H, Hp)   # (3Hp, H)
        w_hh = jnp.pad(w_hh, ((0, 0), (0, Hp - H)))                     # (3Hp, Hp)
        b_ih = _pad_gate_blocks(p["b_ih"].astype(jnp.float32), H, Hp)
        b_hh = _pad_gate_blocks(p["b_hh"].astype(jnp.float32), H, Hp)

        # Fold the r/z parts of b_hh into the precomputed gates; b_hh[n]
        # stays per-step (it sits inside r*(...)).
        b_proj = b_ih + jnp.concatenate(
            [b_hh[:2 * Hp], jnp.zeros((Hp,), jnp.float32)])
        w_cols.append(jnp.pad(w_ih, ((0, 0), (0, Kp - In))).T)          # (Kp, 3Hp)
        b_cols.append(b_proj)
        whh_list.append(w_hh.T.astype(MATMUL_DTYPE))                    # (Hp, 3Hp)
        bhn_list.append(b_hh[2 * Hp:].reshape(1, Hp))                   # (1, Hp)

    w_all = jnp.concatenate(w_cols, axis=1).astype(MATMUL_DTYPE)        # (Kp, 3Hp*nd)
    b_all = jnp.concatenate(b_cols)[None, :]                            # (1, 3Hp*nd)

    # ---------- fused input projection (pipelined, K-reduced matmul) --------
    # x is transposed to time-major BEFORE the projection (x is much smaller
    # than the gates tensor), so no gates transpose is needed afterwards.
    x_p = jnp.pad(x.astype(jnp.float32),
                  ((0, Bp - B), (0, Tp - T), (0, 0)))
    x_tm = x_p.transpose(1, 0, 2).reshape(Tp * Bp, In)
    x_tm = jnp.pad(x_tm, ((0, 0), (0, Kp - In))).astype(MATMUL_DTYPE)   # (rows, Kp)

    rows = Tp * Bp
    N_TILE = 3 * Hp
    ROW_TILE = _pick_row_tile(rows, Kp, N_TILE, vmem_limit)
    K_TILE = _pick_k_tile(Kp)

    gates = pl.pallas_call(
        _proj_kernel,
        out_shape=jax.ShapeDtypeStruct((rows, N_TILE * num_dir), GATE_DTYPE),
        grid_spec=pltpu.PrefetchScalarGridSpec(
            num_scalar_prefetch=0,
            # direction outermost / rows middle -> the weight and bias block
            # indices are invariant along the row axis (no per-row re-DMA).
            grid=(num_dir, rows // ROW_TILE, Kp // K_TILE),
            in_specs=[
                pl.BlockSpec((ROW_TILE, K_TILE), lambda d, i, k: (i, k)),
                pl.BlockSpec((K_TILE, N_TILE), lambda d, i, k: (k, d)),
                pl.BlockSpec((1, N_TILE), lambda d, i, k: (0, d)),
            ],
            out_specs=pl.BlockSpec((ROW_TILE, N_TILE), lambda d, i, k: (i, d)),
            scratch_shapes=[pltpu.VMEM((ROW_TILE, N_TILE), jnp.float32)],
        ),
        compiler_params=pltpu.CompilerParams(
            dimension_semantics=("parallel", "parallel", "arbitrary"),
            vmem_limit_bytes=vmem_limit),
    )(x_tm, w_all, b_all)

    # Row-major reshape only (time-major already) — no gates transpose.
    gates = gates.reshape(Tp, Bp, N_TILE * num_dir)
    len2d = jnp.pad(lengths.astype(jnp.int32), (0, Bp - B)).reshape(Bp, 1)

    # ---------- serial GRU recurrence: (batch tiles) x (time chunks) --------
    T_CHUNK = _pick_time_chunk(Tp)
    n_chunks = Tp // T_CHUNK

    kernel = functools.partial(_gru_recurrence_kernel,
                               bidirectional=bidirectional,
                               hidden=Hp, t_chunk=T_CHUNK)

    gate_spec_f = pl.BlockSpec((T_CHUNK, B_TILE, 3 * Hp),
                               lambda b, c: (c, b, 0))
    whh_spec = pl.BlockSpec((Hp, 3 * Hp), lambda b, c: (0, 0))
    bhn_spec = pl.BlockSpec((1, Hp), lambda b, c: (0, 0))
    len_spec = pl.BlockSpec((B_TILE, 1), lambda b, c: (b, 0))
    # Outputs are written directly in the final (batch, time, hidden) layout.
    out_spec_f = pl.BlockSpec((B_TILE, T_CHUNK, Hp), lambda b, c: (b, c, 0))
    out_shape_one = jax.ShapeDtypeStruct((Bp, Tp, Hp), OUT_DTYPE)

    if bidirectional:
        # Same gates array passed twice with different index_maps: per-
        # direction column offset + reversed chunk order for the bwd pass.
        gate_spec_b = pl.BlockSpec(
            (T_CHUNK, B_TILE, 3 * Hp),
            lambda b, c: (n_chunks - 1 - c, b, 1))
        out_spec_b = pl.BlockSpec(
            (B_TILE, T_CHUNK, Hp),
            lambda b, c: (b, n_chunks - 1 - c, 0))
        args = (gates, gates, whh_list[0], whh_list[1],
                bhn_list[0], bhn_list[1], len2d)
        in_specs = [gate_spec_f, gate_spec_b, whh_spec, whh_spec,
                    bhn_spec, bhn_spec, len_spec]
        out_shape = (out_shape_one, out_shape_one)
        out_specs = (out_spec_f, out_spec_b)
        scratch = [pltpu.VMEM((B_TILE, Hp), jnp.float32),
                   pltpu.VMEM((B_TILE, Hp), jnp.float32)]
    else:
        args = (gates, whh_list[0], bhn_list[0], len2d)
        in_specs = [gate_spec_f, whh_spec, bhn_spec, len_spec]
        out_shape = out_shape_one
        out_specs = out_spec_f
        scratch = [pltpu.VMEM((B_TILE, Hp), jnp.float32)]

    outs = pl.pallas_call(
        kernel,
        out_shape=out_shape,
        grid_spec=pltpu.PrefetchScalarGridSpec(
            num_scalar_prefetch=0,
            grid=(Bp // B_TILE, n_chunks),
            in_specs=in_specs,
            out_specs=out_specs,
            scratch_shapes=scratch,
        ),
        compiler_params=pltpu.CompilerParams(
            # batch tiles shard across TensorCores; the time-chunk axis is a
            # sequential carried dependence (h in VMEM scratch).
            dimension_semantics=("parallel", "arbitrary"),
            vmem_limit_bytes=vmem_limit),
    )(*args)

    # TODO(synk): on v7x with a single batch tile, add a leading direction
    # grid axis (one TensorCore per direction) instead of the fused fw/bw
    # interleave that is optimal on single-core chips.

    # ---------- epilogue: un-pad + dir concat (no transpose pass) -----------
    def _crop(o):
        if B == Bp and T == Tp and H == Hp:
            return o
        return o[:B, :T, :H]

    if bidirectional:
        out_f, out_b = outs
        out = jnp.concatenate([_crop(out_f), _crop(out_b)], axis=-1)
    else:
        out = _crop(outs)
    return out.astype(jnp.float32)


# --------------------------- pure-numpy reference ---------------------------

def bigru_reference(x, lengths, params, hidden_size, bidirectional=True):
    x = np.asarray(x, dtype=np.float32)
    lengths = np.asarray(lengths)
    B, T, _ = x.shape
    H = hidden_size

    def sigmoid(a):
        return 1.0 / (1.0 + np.exp(-a))

    def run_dir(p, reverse):
        w_ih = np.asarray(p["w_ih"]); w_hh = np.asarray(p["w_hh"])
        b_ih = np.asarray(p["b_ih"]); b_hh = np.asarray(p["b_hh"])
        out = np.zeros((B, T, H), np.float32)
        h = np.zeros((B, H), np.float32)
        order = range(T - 1, -1, -1) if reverse else range(T)
        for t in order:
            gx = x[:, t] @ w_ih.T + b_ih
            gh = h @ w_hh.T + b_hh
            r = sigmoid(gx[:, :H] + gh[:, :H])
            z = sigmoid(gx[:, H:2 * H] + gh[:, H:2 * H])
            n = np.tanh(gx[:, 2 * H:] + r * gh[:, 2 * H:])
            h_new = (1.0 - z) * n + z * h
            mask = (lengths > t)[:, None]
            out[:, t] = np.where(mask, h_new, 0.0)
            h = np.where(mask, h_new, h)
        return out

    outs = [run_dir(params[0], False)]
    if bidirectional:
        outs.append(run_dir(params[1], True))
    return np.concatenate(outs, axis=-1)


# ---------------------------------- main ------------------------------------

if __name__ == "__main__":
    B, T, INPUT, HIDDEN = 2, 8, 16, 32
    key = jax.random.PRNGKey(0)
    kx, kp = jax.random.split(key)

    x = jax.random.normal(kx, (B, T, INPUT), jnp.float32)
    lengths = jnp.array([8, 5], dtype=jnp.int32)   # variable valid lengths
    params = init_bigru_params(kp, INPUT, HIDDEN, bidirectional=True)

    out = bigru_forward(x, lengths, params, HIDDEN, bidirectional=True)
    out = jax.block_until_ready(out)
    assert out.shape == (B, T, 2 * HIDDEN), out.shape

    ref = bigru_reference(x, lengths, params, HIDDEN, bidirectional=True)
    # Tolerance loosened vs the f32 reference: MXU operands, the precomputed
    # gates and the stored outputs are bf16 (gate math / h carry stay f32).
    np.testing.assert_allclose(np.asarray(out), ref, rtol=5e-2, atol=5e-2)

    print("KERNEL_OK")
</pallas_src>

<mosaic_0001>
module attributes {stable_mosaic.version = 11 : i64} {
  func.func @_proj_kernel(%arg0: i32, %arg1: i32, %arg2: i32, %arg3: memref<256x128xbf16, #tpu.memory_space<vmem>>, %arg4: memref<128x384xbf16, #tpu.memory_space<vmem>>, %arg5: memref<1x384xf32, #tpu.memory_space<vmem>>, %arg6: memref<256x384xbf16, #tpu.memory_space<vmem>>, %arg7: memref<256x384xf32, #tpu.memory_space<vmem>>) attributes {dimension_semantics = [#tpu.dimension_semantics<parallel>, #tpu.dimension_semantics<parallel>, #tpu.dimension_semantics<arbitrary>], iteration_bounds = array<i64: 2, 1, 1>, scalar_prefetch = 0 : i64, scratch_operands = 1 : i64, tpu.core_type = #tpu.core_type<tc>, window_params = [{transform_indices = @transform_0, window_bounds = array<i64: 256, 128>}, {transform_indices = @transform_1, window_bounds = array<i64: 128, 384>}, {transform_indices = @transform_2, window_bounds = array<i64: 1, 384>}, {transform_indices = @transform_3, window_bounds = array<i64: 256, 384>}]} {
    %c0_i32 = arith.constant 0 : i32
    %0 = arith.cmpi eq, %arg2, %c0_i32 : i32
    %1 = arith.extui %0 : i1 to i32
    %c0_i32_0 = arith.constant 0 : i32
    %2 = arith.cmpi ne, %1, %c0_i32_0 : i32
    scf.if %2 {
      %cst_10 = arith.constant 0.000000e+00 : f32
      %12 = vector.broadcast %cst_10 : f32 to vector<256x384xf32>
      %c0_11 = arith.constant 0 : index
      %c0_12 = arith.constant 0 : index
      %13 = vector.load %arg7[%c0_11, %c0_12] : memref<256x384xf32, #tpu.memory_space<vmem>>, vector<256x384xf32>
      tpu.vector_store %arg7[%c0_11, %c0_12], %12 {strides = array<i32>} : memref<256x384xf32, #tpu.memory_space<vmem>>, vector<256x384xf32>,
    } else {
    }
    %c0 = arith.constant 0 : index
    %c0_1 = arith.constant 0 : index
    %3 = vector.load %arg7[%c0, %c0_1] : memref<256x384xf32, #tpu.memory_space<vmem>>, vector<256x384xf32>
    %c0_2 = arith.constant 0 : index
    %c0_3 = arith.constant 0 : index
    %4 = vector.load %arg3[%c0_2, %c0_3] : memref<256x128xbf16, #tpu.memory_space<vmem>>, vector<256x128xbf16>
    %c0_4 = arith.constant 0 : index
    %c0_5 = arith.constant 0 : index
    %5 = vector.load %arg4[%c0_4, %c0_5] : memref<128x384xbf16, #tpu.memory_space<vmem>>, vector<128x384xbf16>
    %cst = arith.constant dense<0.000000e+00> : vector<256x384xf32>
    %6 = tpu.matmul %4, %5, %cst {dimension_numbers = #tpu.dot_dimension_numbers<[1], [0], [0], [1], [0, 0, 1, 1], [], []>} : vector<256x128xbf16>, vector<128x384xbf16>, vector<256x384xf32> -> vector<256x384xf32>
    %7 = arith.addf %3, %6 : vector<256x384xf32>
    %c0_6 = arith.constant 0 : index
    %c0_7 = arith.constant 0 : index
    %8 = vector.load %arg7[%c0_6, %c0_7] : memref<256x384xf32, #tpu.memory_space<vmem>>, vector<256x384xf32>
    tpu.vector_store %arg7[%c0_6, %c0_7], %7 {strides = array<i32>} : memref<256x384xf32, #tpu.memory_space<vmem>>, vector<256x384xf32>,
    %c0_i32_8 = arith.constant 0 : i32
    %9 = arith.cmpi eq, %arg2, %c0_i32_8 : i32
    %10 = arith.extui %9 : i1 to i32
    %c0_i32_9 = arith.constant 0 : i32
    %11 = arith.cmpi ne, %10, %c0_i32_9 : i32
    scf.if %11 {
      %c0_10 = arith.constant 0 : index
      %c0_11 = arith.constant 0 : index
      %12 = vector.load %arg7[%c0_10, %c0_11] : memref<256x384xf32, #tpu.memory_space<vmem>>, vector<256x384xf32>
      %c0_12 = arith.constant 0 : index
      %c0_13 = arith.constant 0 : index
      %13 = vector.load %arg5[%c0_12, %c0_13] : memref<1x384xf32, #tpu.memory_space<vmem>>, vector<1x384xf32>
      %14 = vector.broadcast %13 : vector<1x384xf32> to vector<256x384xf32>
      %15 = arith.addf %12, %14 : vector<256x384xf32>
      %16 = arith.truncf %15 : vector<256x384xf32> to vector<256x384xbf16>
      %c0_14 = arith.constant 0 : index
      %c0_15 = arith.constant 0 : index
      %17 = vector.load %arg6[%c0_14, %c0_15] : memref<256x384xbf16, #tpu.memory_space<vmem>>, vector<256x384xbf16>
      tpu.vector_store %arg6[%c0_14, %c0_15], %16 {strides = array<i32>} : memref<256x384xbf16, #tpu.memory_space<vmem>>, vector<256x384xbf16>,
    } else {
    }
    return
  }
  func.func @transform_0(%arg0: i32, %arg1: i32, %arg2: i32) -> (i32, i32) {
    %c0_i32 = arith.constant 0 : i32
    return %arg1, %arg2 : i32, i32
  }
  func.func @transform_1(%arg0: i32, %arg1: i32, %arg2: i32) -> (i32, i32) {
    %c0_i32 = arith.constant 0 : i32
    return %arg2, %arg0 : i32, i32
  }
  func.func @transform_2(%arg0: i32, %arg1: i32, %arg2: i32) -> (i32, i32) {
    %c0_i32 = arith.constant 0 : i32
    %c0_i32_0 = arith.constant 0 : i32
    return %c0_i32, %arg0 : i32, i32
  }
  func.func @transform_3(%arg0: i32, %arg1: i32, %arg2: i32) -> (i32, i32) {
    %c0_i32 = arith.constant 0 : i32
    return %arg1, %arg0 : i32, i32
  }
}

</mosaic_0001>

<bundles_post_ra>
// kernel: tpu_custom_call.1
= control target key start
LH: loop header
LB: loop body
LE: loop exit
PB: predicated region body
PF: predicated region fallthrough
CT: control target
= control target key end

     0   :  { %8 = vsyncpa [#allocation4], 0  ;;  %s3094_s0 = inlined_call_operand.hbm [shape: bf16[256,128], index: 0, kind: input, shape index: {}]   ;;  %s3095_s1 = inlined_call_operand.hbm [shape: bf16[128,768], index: 1, kind: input, shape index: {}]   ;;  %s3096_s2 = inlined_call_operand.hbm [shape: f32[1,768], index: 2, kind: input, shape index: {}]   ;;  %s3097_s3 = inlined_call_operand.hbm [shape: bf16[256,768], index: 3, kind: output, shape index: {}]  }
   0x1   :  { %9 = vsyncpa [#allocation7], 0 }
   0x2   :  { %11 = vsyncpa [#allocation7 + $0x1], 0 }
   0x3   :  { %12 = vsyncpa [#allocation5], 0 }
   0x4   :  { %14 = vsyncpa [#allocation5 + $0x1], 0  ;;  %s2664_s12 = smov 0   ;;  %s2666_s13 = smov 0  }
   0x5   :  { %s2668_s14 = smov 0   ;;  %s2670_s15 = smov 0  }
   0x6   :  { %s2672_s16 = smov 0   ;;  %s2674_s17 = smov 0  }
   0x7 LB: > { %s39_s18 = sadd.s32 1, %s2625_s16  ;;  %s76_s19 = sadd.s32 1, %s2617_s14  ;;  %s2629_s17 = sphi %s2674_s17, %s20_s17   ;;  %s2625_s16 = sphi %s2672_s16, %s3117_s16   ;;  %s2621_s15 = sphi %s2670_s15, %s3116_s15   ;;  %s2617_s14 = sphi %s2668_s14, %s3115_s14   ;;  %s2613_s13 = sphi %s2666_s13, %s3114_s13   ;;  %s2609_s12 = sphi %s2664_s12, %s3113_s12  }
   0x8   : > { %p41_p0 = scmp.ge.s32.totalorder %s39_s18, 2  ;;  %p83_p1 = scmp.ne.s32.totalorder %s2617_s14, %s2613_s13 }
   0x9   : > { %p84_p2 = scmp.eq.s32.totalorder %s2629_s17, 0  ;;  %p2354_p5 = scmp.lt.s32.totalorder %s2629_s17, 2 }
   0xa   : > { %s3119_s18 = smov (%p41_p0, %s39_s18), 0  ;;  %s184_s21 = sand.u32 1, %s2629_s17  }
   0xb   : > { %p85_p4 = por %p84_p2, %p83_p1  ;;  %s72_s20 = ssub.s32 %s2625_s16, %s3119_s18 }
   0xc   : > { %p74_p6 = scmp.eq.s32.totalorder %s72_s20, 0  ;;  %s186_s22 = sand.u32 1, %s2617_s14  }
   0xd   : > { %s2168_s23 = smul.u32 192, %s2625_s16  ;;  %p2719_p7 = pnand %p2354_p5, %p85_p4 }
   0xe   : > { %s2712_s24 = scalar_select %p74_p6, %s2617_s14, %s76_s19  }
   0xf   : > { %s2323_s25 = smul.u32 192, %s186_s22  ;;  %s197_s28 = scalar_lea.hbm %s3095_s1, %s2168_s23 }
  0x10   : > { %s2723_s5 = scalar_lea.sflag [#allocation7], %s184_s21  ;;  %p3099_p8 = pneg %p2719_p7 }
  0x11   : > { %s188_s30 = scalar_lea.vmem [#allocation6], %s2323_s25  ;;  %s2631_s7 = smov [#allocation6]  }
  0x12   : > { %s198_s4 = sshll.u32 %s188_s30, 4  ;;  %s2481_s8 = sshll.u32 %s2631_s7, 4  ;;  %s199_s4 = int_to_ptr.vmem [resolvable:$true] %s198_s4  ;;  %s2482_s8 = int_to_ptr.vmem [resolvable:$false] %s2481_s8 }
  0x13   : > { %s2476_s6 = scalar_lea.vmem %s199_s4, 3072  ;;  %s2483_s9 = scalar_lea.vmem %s2482_s8, 6144 }
  0x14   : > { %p2477_p9 = scmp.ne.s32.totalorder %s199_s4, %s2476_s6  ;;  %p2484_p12 = scmp.lt.s32.totalorder %s199_s4, %s2482_s8 }
  0x15   : > { %p2485_p13 = scmp.lt.s32.totalorder %s2483_s9, %s2476_s6 }
  0x16   : > { %p2479_p10 = pnand %p2477_p9, %p3099_p8 }
  0x17   : > { %p2486_p0 = por %p2485_p13, %p2484_p12 }
  0x18   : > { %p2480_p11 = pneg %p2479_p10 }
  0x1a   : > { %p2487_p2 = pnand %p2486_p0, %p2480_p11 }
  0x1c   : > { %2490 = shalt.err (!%p2487_p2)
}
  0x1d   : > { %s2632_s10 = smov 384   ;;  %s2633_s11 = smov 192  }
  0x1e   : > { %s2634_s19 = smov 12   ;;  %s2734_s20 = sadd.s32 4294967295, %s2629_s17  }
  0x1f   : > { %2345 = dma.hbm_to_vmem [thread:$0]  (!%p2719_p7), %s197_s28, 3072, %s199_s4, %s2723_s5, %s2632_s10, %s2633_s11, %s2634_s19  }
  0x20   : > { %s2053_s21 = sadd.s32 4294967294, %s2629_s17   ;;  %p89_p4 = scmp.ne.s32.totalorder %s2613_s13, %s2609_s12 }
  0x21   : > { %p3098_p5 = scmp.eq.s32.totalorder %s2734_s20, 0  ;;  %p141_p6 = scmp.eq.s32.totalorder %s2734_s20, 1 }
  0x22   : > { %p147_p9 = scmp.eq.s32.totalorder %s2053_s21, 1  ;;  %p2054_p11 = scmp.ge.s32.totalorder %s2629_s17, 1 }
  0x23   : > { %p2743_p10 = por %p3098_p5, %p89_p4  ;;  %p2751_p12 = por %p141_p6, %p83_p1 }
  0x24   : > { %p2755_p13 = por %p147_p9, %p89_p4  ;;  %p154_p0 = scmp.lt.s32.totalorder %s2629_s17, 3 }
  0x25   : > { %s3103_s25 = scalar_select %p2751_p12, 1, 0 }
  0x26   : > { %s3104_s26 = scalar_select %p2755_p13, 1, 0 }
  0x27   : > { %p2760_p2 = pnand %p2054_p11, %p154_p0  ;;  %s2635_s28 = smov [#allocation3]  }
  0x28   : > { %s170_s30 = sshll.u32 %s2635_s28, 4  ;;  %s2324_s4 = smul.u32 3, %s186_s22  ;;  %s171_s30 = int_to_ptr.vmem [resolvable:$true] %s170_s30 }
  0x29   : > { %p2338_p3 = pneg %p2760_p2  ;;  %s2169_s6 = smul.u32 48, %s2625_s16 }
  0x2a   : > { %s212_s11 = scalar_lea.vmem [#allocation8], %s2324_s4  ;;  %s2502_s21 = scalar_lea.vmem %s171_s30, 2048 }
  0x2b   : > { %p2771_p1 = pnand %p2338_p3, %p3098_p5  ;;  %s2778_s10 = scalar_lea.hbm %s3096_s2, %s2169_s6 }
  0x2c   : > { %s220_s19 = sshll.u32 %s212_s11, 4  ;;  %p2503_p6 = scmp.ne.s32.totalorder %s171_s30, %s2502_s21  ;;  %s221_s19 = int_to_ptr.vmem [resolvable:$true] %s220_s19 }
  0x2d   : > { %p2493_p4 = pneg %p2771_p1  ;;  %p2510_p0 = scmp.lt.s32.totalorder %s171_s30, %s171_s30 }
  0x2e   : > { %p2511_p3 = scmp.lt.s32.totalorder %s2502_s21, %s2502_s21 }
  0x2f   : > { %p2505_p9 = pnand %p2503_p6, %p2493_p4 }
  0x30   : > { %p2512_p5 = por %p2511_p3, %p2510_p0 }
  0x31   : > { %p2506_p11 = pneg %p2505_p9 }
  0x33   : > { %p2513_p8 = pnand %p2512_p5, %p2506_p11 }
  0x35   : > { %2516 = shalt.err (!%p2513_p8)
}
  0x36   : > { %s2636_s22 = smov 64   ;;  %s2637_s28 = smov 4  }
  0x37   : > { %2341 = dma.hbm_to_vmem [thread:$0]  (!%p2771_p1), %s3094_s0, 2048, %s171_s30, [#allocation4], %s2636_s22, %s2636_s22, %s2637_s28  }
  0x38   : > { %s2530_s8 = scalar_lea.vmem %s221_s19, 48  ;;  %p3107_p12 = pneg %p2719_p7 }
  0x39   : > { %p2531_p13 = scmp.ne.s32.totalorder %s221_s19, %s2530_s8  ;;  %s2638_s9 = smov [#allocation8]  }
  0x3a   : > { %s2535_s11 = sshll.u32 %s2638_s9, 4  ;;  %s2536_s11 = int_to_ptr.vmem [resolvable:$false] %s2535_s11 }
  0x3b   : > { %p2533_p4 = pnand %p2531_p13, %p3107_p12  ;;  %s2537_s21 = scalar_lea.vmem %s2536_s11, 96 }
  0x3c   : > { %p2538_p8 = scmp.lt.s32.totalorder %s221_s19, %s2536_s11  ;;  %p2539_p5 = scmp.lt.s32.totalorder %s2537_s21, %s2530_s8 }
  0x3d   : > { %p2534_p6 = pneg %p2533_p4 }
  0x3e   : > { %p2540_p9 = por %p2539_p5, %p2538_p8 }
  0x40   : > { %p2541_p11 = pnand %p2540_p9, %p2534_p6 }
  0x42   : > { %2544 = shalt.err (!%p2541_p11)
}
  0x43   : > { %2348 = dma.hbm_to_vmem [thread:$0]  (!%p2719_p7), %s2778_s10, 48, %s221_s19, %s2723_s5  }
  0x44   : > { %229 = sbr.rel (%p2760_p2) target bundleno = 419 (0x1a3), region = 32  ;;  %p3108_p12 = scmp.eq.s32.totalorder (!%p2760_p2), %s2734_s20, 0 }
  0x49   : > { %2596 = dma.done.wait (%p3108_p12), [#allocation4], 2048   ;;  %p3109_p13 = pmov %p3108_p12 }
  0x4a   : > { %s235_s30 = sand.u32 1, %s2734_s20   ;;  %s2802_s7 = sand.u32 1, %s2613_s13  }
  0x4b   : > { %2598 = vsyncadd (%p3109_p13), [#allocation4], 4294965248  ;;  %s2325_s29 = smul.u32 192, %s2802_s7  ;;  %s236_s22 = scalar_lea.sflag [#allocation7], %s235_s30 }
  0x4d   : > { %s2805_s28 = scalar_lea.vmem [#allocation6], %s2325_s29 }
  0x4e   : > { %2600 = dma.done.wait (%p2743_p10), %s236_s22, 3120  }
  0x4f   : > { %2602 = vsyncadd (%p2743_p10), %s236_s22, 4294964176  ;;  %v2639_v0 = vmov 0   ;;  %v2415_v1 = vld [vmem:[%s2805_s28 + $0xac] ss:$12 sps:$4 sm:$0xff]   ;;  %v2417_v2 = vld [vmem:[%s2805_s28 + $0xa8] ss:$12 sps:$4 sm:$0xff]   ;;  %v1414_v41 = vlaneseq }
  0x50   : > { %799 = vmatprep.mubr.bf16.mxu0 %v2639_v0  ;;  %919 = vmatprep.mubr.bf16.mxu1 %v2639_v0  ;;  %v2418_v3 = vld [vmem:[%s2805_s28 + $0x94] ss:$12 sps:$4 sm:$0xff]   ;;  %v2420_v4 = vld [vmem:[%s2805_s28 + $0x90] ss:$12 sps:$4 sm:$0xff]   ;;  %v2423_v6 = vld [vmem:[%s2805_s28 + $0x78] ss:$12 sps:$4 sm:$0xff]  }
  0x51   : > { %767 = vmatprep.subr.bf16.mxu0 %v2415_v1  ;;  %2307 = vmatprep.subr.bf16.mxu1 %v2415_v1  ;;  %v2421_v5 = vld [vmem:[%s2805_s28 + $0x7c] ss:$12 sps:$4 sm:$0xff]   ;;  %v2424_v7 = vld [vmem:[%s2805_s28 + $0x64] ss:$12 sps:$4 sm:$0xff]   ;;  %v2426_v8 = vld [vmem:[%s2805_s28 + $0x60] ss:$12 sps:$4 sm:$0xff]  }
  0x52   : > { %768 = vmatpush1.bf16.msra.mxu0 %v2417_v2  ;;  %2315 = vmatpush1.bf16.msra.mxu1 %v2417_v2  ;;  %v2427_v9 = vld [vmem:[%s2805_s28 + $0x4c] ss:$12 sps:$4 sm:$0xff]   ;;  %v2429_v10 = vld [vmem:[%s2805_s28 + $0x48] ss:$12 sps:$4 sm:$0xff]   ;;  %v2432_v12 = vld [vmem:[%s2805_s28 + $0x30] ss:$12 sps:$4 sm:$0xff]  }
  0x53   : > { %769 = vmatprep.subr.bf16.mxu0 %v2418_v3  ;;  %2308 = vmatprep.subr.bf16.mxu1 %v2418_v3  ;;  %v2430_v11 = vld [vmem:[%s2805_s28 + $0x34] ss:$12 sps:$4 sm:$0xff]   ;;  %v2433_v13 = vld [vmem:[%s2805_s28 + $0x1c] ss:$12 sps:$4 sm:$0xff]   ;;  %v2435_v14 = vld [vmem:[%s2805_s28 + $0x18] ss:$12 sps:$4 sm:$0xff]  }
  0x54   : > { %v2436_v15 = vld [vmem:[%s2805_s28 + $0x4] ss:$12 sps:$4 sm:$0xff]   ;;  %v2438_v16 = vld [vmem:[%s2805_s28] ss:$12 sps:$4 sm:$0xff]   ;;  %v2446_v24 = vld [vmem:[%s2805_s28 + $0x68] ss:$12 sps:$4 sm:$0xff]  }
  0x55   : > { %v2441_v17 = vld [vmem:[%s2805_s28 + $0xb0] ss:$12 sps:$4 sm:$0xff]   ;;  %v2439_v18 = vld [vmem:[#allocation3] sm:$0xff]   ;;  %v2443_v22 = vld [vmem:[#allocation3 + $0x8] sm:$0xff]   ;;  %s2326_s5 = smul.u32 3, %s2802_s7  ;;  %v2860_v42 = vshrl.u32 %v1414_v41, 7 }
  0x56   : > { %770 = vmatpush1.bf16.msra.mxu0 %v2420_v4  ;;  %2316 = vmatpush1.bf16.msra.mxu1 %v2420_v4  ;;  %v2830_v19 = vld [vmem:[#allocation3 + $0x60] sm:$0xff]   ;;  %v2837_v23 = vld [vmem:[#allocation3 + $0x68] sm:$0xff]   ;;  %v2449_v25 = vld [vmem:[%s2805_s28 + $0x50] ss:$12 sps:$4 sm:$0xff]   ;;  %s2327_s23 = smul.u32 384, %s2802_s7  ;;  %s1910_s8 = scalar_lea.sflag [#allocation5], %s2802_s7 }
  0x57   : > { %771 = vmatprep.subr.bf16.mxu0 %v2421_v5  ;;  %2309 = vmatprep.subr.bf16.mxu1 %v2421_v5  ;;  %v2442_v20 = vld [vmem:[%s2805_s28 + $0x98] ss:$12 sps:$4 sm:$0xff]   ;;  %v2445_v21 = vld [vmem:[%s2805_s28 + $0x80] ss:$12 sps:$4 sm:$0xff]   ;;  %v2447_v26 = vld [vmem:[#allocation3 + $0x10] sm:$0xff]   ;;  %v1416_v43 = vsub.s32 0, %v2860_v42 }
  0x58   : > { %v2448_v27 = vld [vmem:[#allocation3 + $0x70] sm:$0xff]   ;;  %v2450_v28 = vld [vmem:[%s2805_s28 + $0x38] ss:$12 sps:$4 sm:$0xff]   ;;  %v2453_v29 = vld [vmem:[%s2805_s28 + $0x20] ss:$12 sps:$4 sm:$0xff]   ;;  %v1420_v44 = vsub.s32 1, %v2860_v42 }
  0x59   : > { %v2451_v30 = vld [vmem:[#allocation3 + $0x18] sm:$0xff]   ;;  %v2454_v32 = vld [vmem:[%s2805_s28 + $0x8] ss:$12 sps:$4 sm:$0xff]   ;;  %v2455_v33 = vld [vmem:[#allocation3 + $0x20] sm:$0xff]   ;;  %s248_s20 = scalar_lea.vmem [#allocation8], %s2326_s5  ;;  %s2877_s27 = scalar_lea.vmem [#allocation9], %s2327_s23 }
  0x5a   : > { %772 = vmatpush1.bf16.msra.mxu0 %v2423_v6  ;;  %2317 = vmatpush1.bf16.msra.mxu1 %v2423_v6  ;;  %v2452_v31 = vld [vmem:[#allocation3 + $0x78] sm:$0xff]   ;;  %v2456_v34 = vld [vmem:[#allocation3 + $0x28] sm:$0xff]   ;;  %v2457_v35 = vld [vmem:[#allocation3 + $0x30] sm:$0xff]   ;;  %s2234_s10 = smul.u32 192, %s2621_s15  ;;  %s1926_s19 = sshll.u32 %s2877_s27, 4  ;;  %s3043_s19 = int_to_ptr.vmem [resolvable:$true] %s1926_s19 }
  0x5b   : > { %773 = vmatprep.subr.bf16.mxu0 %v2424_v7  ;;  %2310 = vmatprep.subr.bf16.mxu1 %v2424_v7  ;;  %v2458_v36 = vld [vmem:[#allocation3 + $0x38] sm:$0xff]   ;;  %v2459_v37 = vld [vmem:[#allocation3 + $0x40] sm:$0xff]   ;;  %v2460_v38 = vld [vmem:[#allocation3 + $0x48] sm:$0xff]   ;;  %s2545_s9 = scalar_lea.vmem %s3043_s19, 6144  ;;  %p3110_p10 = scmp.ne.s32.totalorder %s3103_s25, 0 }
  0x5c   : > { %v2461_v39 = vld [vmem:[#allocation3 + $0x50] sm:$0xff]   ;;  %v2462_v40 = vld [vmem:[#allocation3 + $0x58] sm:$0xff]   ;;  %v2864_v45 = vld [vmem:[%s248_s20] sm:$0x7]  ;;  %s3041_s4 = scalar_lea.hbm %s3097_s3, %s2234_s10  ;;  %p2546_p7 = scmp.ne.s32.totalorder %s3043_s19, %s2545_s9 }
  0x5d   : > { %v2867_v46 = vrot.slane %v2864_v45, %v1416_v43  ;;  %v2870_v47 = vrot.slane %v2864_v45, %v1420_v44  ;;  %s2640_s11 = smov [#allocation9]  }
  0x5e   : > { %774 = vmatpush1.bf16.msra.mxu0 %v2426_v8  ;;  %2318 = vmatpush1.bf16.msra.mxu1 %v2426_v8  ;;  %p2547_p2 = pnand %p2546_p7, %p3110_p10  ;;  %s2549_s21 = sshll.u32 %s2640_s11, 4  ;;  %s2550_s21 = int_to_ptr.vmem [resolvable:$false] %s2549_s21 }
  0x5f   : > { %775 = vmatprep.subr.bf16.mxu0 %v2427_v9  ;;  %2311 = vmatprep.subr.bf16.mxu1 %v2427_v9  ;;  %s2551_s30 = scalar_lea.vmem %s2550_s21, 12288  ;;  %p2552_p0 = scmp.lt.s32.totalorder %s3043_s19, %s2550_s21 }
  0x60   : > { %p2548_p1 = pneg %p2547_p2  ;;  %p2553_p3 = scmp.lt.s32.totalorder %s2551_s30, %s2545_s9 }
  0x62   : > { %776 = vmatpush1.bf16.msra.mxu0 %v2429_v10  ;;  %2319 = vmatpush1.bf16.msra.mxu1 %v2429_v10  ;;  %p2554_p4 = por %p2553_p3, %p2552_p0 }
  0x63   : > { %777 = vmatprep.subr.bf16.mxu0 %v2430_v11  ;;  %2312 = vmatprep.subr.bf16.mxu1 %v2430_v11 }
  0x64   : > { %p2555_p6 = pnand %p2554_p4, %p2548_p1 }
  0x66   : > { %778 = vmatpush1.bf16.msra.mxu0 %v2432_v12  ;;  %2320 = vmatpush1.bf16.msra.mxu1 %v2432_v12 }
  0x67   : > { %779 = vmatprep.subr.bf16.mxu0 %v2433_v13  ;;  %2313 = vmatprep.subr.bf16.mxu1 %v2433_v13 }
  0x6a   : > { %780 = vmatpush1.bf16.msra.mxu0 %v2435_v14  ;;  %2321 = vmatpush1.bf16.msra.mxu1 %v2435_v14 }
  0x6b   : > { %781 = vmatprep.subr.bf16.mxu0 %v2436_v15  ;;  %2314 = vmatprep.subr.bf16.mxu1 %v2436_v15 }
  0x6e   : > { %782 = vmatpush1.bf16.msra.mxu0 %v2438_v16  ;;  %2322 = vmatpush1.bf16.msra.mxu1 %v2438_v16 }
  0x6f   : > { %2259 = vmatprep.subr.bf16.mxu1 %v2441_v17 }
  0x71   : > { %800 = vmatmul.mubr.bf16.vlgmr.msra.gmra.mxu0 %v2439_v18  ;;  %920 = vmatmul.mubr.bf16.vlgmr.msra.gmra.mxu1 %v2830_v19 }
  0x72   : > { %2260 = vmatpush3.bf16.msra.mxu1 %v2441_v17  ;;  %809 = vmatprep.mubr.bf16.mxu0 %v2639_v0 }
  0x73   : > { %2261 = vmatprep.subr.bf16.mxu1 %v2442_v20  ;;  %929 = vmatprep.mubr.bf16.mxu1 %v2639_v0 }
  0x76   : > { %2262 = vmatpush3.bf16.msra.mxu1 %v2442_v20 }
  0x77   : > { %2263 = vmatprep.subr.bf16.mxu1 %v2445_v21 }
  0x79   : > { %810 = vmatmul.mubr.bf16.gmra.mxu0 %v2443_v22  ;;  %930 = vmatmul.mubr.bf16.gmra.mxu1 %v2837_v23 }
  0x7a   : > { %2264 = vmatpush3.bf16.msra.mxu1 %v2445_v21  ;;  %819 = vmatprep.mubr.bf16.mxu0 %v2639_v0 }
  0x7b   : > { %2265 = vmatprep.subr.bf16.mxu1 %v2446_v24  ;;  %939 = vmatprep.mubr.bf16.mxu1 %v2639_v0 }
  0x7e   : > { %2266 = vmatpush3.bf16.msra.mxu1 %v2446_v24 }
  0x7f   : > { %2267 = vmatprep.subr.bf16.mxu1 %v2449_v25 }
  0x81   : > { %820 = vmatmul.mubr.bf16.gmra.mxu0 %v2447_v26  ;;  %940 = vmatmul.mubr.bf16.gmra.mxu1 %v2448_v27 }
  0x82   : > { %2268 = vmatpush3.bf16.msra.mxu1 %v2449_v25  ;;  %829 = vmatprep.mubr.bf16.mxu0 %v2639_v0 }
  0x83   : > { %2269 = vmatprep.subr.bf16.mxu1 %v2450_v28  ;;  %949 = vmatprep.mubr.bf16.mxu1 %v2639_v0 }
  0x86   : > { %2270 = vmatpush3.bf16.msra.mxu1 %v2450_v28 }
  0x87   : > { %2271 = vmatprep.subr.bf16.mxu1 %v2453_v29 }
  0x89   : > { %830 = vmatmul.mubr.bf16.gmra.mxu0 %v2451_v30  ;;  %950 = vmatmul.mubr.bf16.gmra.mxu1 %v2452_v31 }
  0x8a   : > { %2272 = vmatpush3.bf16.msra.mxu1 %v2453_v29  ;;  %839 = vmatprep.mubr.bf16.mxu0 %v2639_v0 }
  0x8b   : > { %2273 = vmatprep.subr.bf16.mxu1 %v2454_v32  ;;  %2275 = vmatprep.mubr.bf16.mxu1 %v2439_v18 }
  0x8e   : > { %2274 = vmatpush3.bf16.msra.mxu1 %v2454_v32 }
  0x91   : > { %840 = vmatmul.mubr.bf16.gmra.mxu0 %v2455_v33  ;;  %2276 = vmatmul.mubr.bf16.vlgmr.msra.gmra.mxu1 %v2443_v22 }
  0x92   : > { %849 = vmatprep.mubr.bf16.mxu0 %v2639_v0  ;;  %2279 = vmatprep.mubr.bf16.mxu1 %v2447_v26 }
  0x99   : > { %850 = vmatmul.mubr.bf16.gmra.mxu0 %v2456_v34  ;;  %2280 = vmatmul.mubr.bf16.gmra.mxu1 %v2451_v30 }
  0x9a   : > { %859 = vmatprep.mubr.bf16.mxu0 %v2639_v0  ;;  %2283 = vmatprep.mubr.bf16.mxu1 %v2455_v33 }
  0xa1   : > { %860 = vmatmul.mubr.bf16.gmra.mxu0 %v2457_v35  ;;  %2284 = vmatmul.mubr.bf16.gmra.mxu1 %v2456_v34 }
  0xa2   : > { %869 = vmatprep.mubr.bf16.mxu0 %v2639_v0  ;;  %2287 = vmatprep.mubr.bf16.mxu1 %v2457_v35 }
  0xa9   : > { %870 = vmatmul.mubr.bf16.gmra.mxu0 %v2458_v36  ;;  %2288 = vmatmul.mubr.bf16.gmra.mxu1 %v2458_v36 }
  0xaa   : > { %879 = vmatprep.mubr.bf16.mxu0 %v2639_v0  ;;  %2291 = vmatprep.mubr.bf16.mxu1 %v2459_v37 }
  0xb1   : > { %880 = vmatmul.mubr.bf16.gmra.mxu0 %v2459_v37  ;;  %2292 = vmatmul.mubr.bf16.gmra.mxu1 %v2460_v38 }
  0xb2   : > { %889 = vmatprep.mubr.bf16.mxu0 %v2639_v0  ;;  %2295 = vmatprep.mubr.bf16.mxu1 %v2461_v39 }
  0xb9   : > { %890 = vmatmul.mubr.bf16.gmra.mxu0 %v2460_v38  ;;  %2296 = vmatmul.mubr.bf16.gmra.mxu1 %v2462_v40 }
  0xba   : > { %899 = vmatprep.mubr.bf16.mxu0 %v2639_v0  ;;  %2299 = vmatprep.mubr.bf16.mxu1 %v2830_v19 }
  0xc1   : > { %900 = vmatmul.mubr.bf16.gmra.mxu0 %v2461_v39  ;;  %2300 = vmatmul.mubr.bf16.gmra.mxu1 %v2837_v23 }
  0xc2   : > { %909 = vmatprep.mubr.bf16.mxu0 %v2639_v0  ;;  %2303 = vmatprep.mubr.bf16.mxu1 %v2448_v27 }
  0xc9   : > { %910 = vmatmul.mubr.bf16.gmra.mxu0 %v2462_v40  ;;  %2304 = vmatmul.mubr.bf16.gmra.mxu1 %v2452_v31 }
 0x131   : > { %v801_v48 = vpop.f32.mrf.mxu0  ;;  %v921_v49 = vpop.f32.mrf.mxu1 }
 0x132   : > { %v1429_v52 = vadd.f32 %v2867_v46, %v801_v48  ;;  %v1501_v53 = vadd.f32 %v2867_v46, %v921_v49 }
 0x133   : > { %v803_v50 = vpop.f32.mrf.mxu0  ;;  %v923_v51 = vpop.f32.mrf.mxu1 }
 0x134   : > { %v1430_v54 = vadd.f32 %v2870_v47, %v803_v50  ;;  %v1502_v55 = vadd.f32 %v2870_v47, %v923_v51  ;;  %v1424_v50 = vsub.s32 2, %v2860_v42 }
 0x135   : > { %v805_v56 = vpop.f32.mrf.mxu0  ;;  %v925_v57 = vpop.f32.mrf.mxu1 }
 0x136   : > { %v2170_v58 = vpack.c.bf16 %v1430_v54, %v1429_v52  ;;  %v2218_v59 = vpack.c.bf16 %v1502_v55, %v1501_v53  ;;  %v1432_v62 = vadd.f32 %v2867_v46, %v805_v56  ;;  %v1504_v63 = vadd.f32 %v2867_v46, %v925_v57 }
 0x137   : > { %v807_v60 = vpop.f32.mrf.mxu0  ;;  %v927_v61 = vpop.f32.mrf.mxu1  ;;  %v2917_v42 = vrot.slane %v2864_v45, %v1424_v50 }
 0x138   : > { %1845 = vst [vmem:[%s2877_s27] sm:$0xff] %v2170_v58  ;;  %1893 = vst [vmem:[%s2877_s27 + $0x120] sm:$0xff] %v2218_v59  ;;  %v1433_v0 = vadd.f32 %v2870_v47, %v807_v60  ;;  %v1505_v1 = vadd.f32 %v2870_v47, %v927_v61 }
 0x139   : > { %v811_v2 = vpop.f32.mrf.mxu0  ;;  %v931_v3 = vpop.f32.mrf.mxu1 }
 0x13a   : > { %v2172_v4 = vpack.c.bf16 %v1433_v0, %v1432_v62  ;;  %v2220_v5 = vpack.c.bf16 %v1505_v1, %v1504_v63  ;;  %v1435_v8 = vadd.f32 %v2867_v46, %v811_v2  ;;  %v1507_v9 = vadd.f32 %v2867_v46, %v931_v3 }
 0x13b   : > { %v813_v6 = vpop.f32.mrf.mxu0  ;;  %v933_v7 = vpop.f32.mrf.mxu1 }
 0x13c   : > { %1847 = vst [vmem:[%s2877_s27 + $0xc] sm:$0xff] %v2172_v4  ;;  %1895 = vst [vmem:[%s2877_s27 + $0x12c] sm:$0xff] %v2220_v5  ;;  %v1436_v10 = vadd.f32 %v2870_v47, %v813_v6  ;;  %v1508_v11 = vadd.f32 %v2870_v47, %v933_v7 }
 0x13d   : > { %v815_v12 = vpop.f32.mrf.mxu0  ;;  %v935_v13 = vpop.f32.mrf.mxu1 }
 0x13e   : > { %v2174_v14 = vpack.c.bf16 %v1436_v10, %v1435_v8  ;;  %v2222_v15 = vpack.c.bf16 %v1508_v11, %v1507_v9  ;;  %v1438_v18 = vadd.f32 %v2867_v46, %v815_v12  ;;  %v1510_v19 = vadd.f32 %v2867_v46, %v935_v13 }
 0x13f   : > { %v817_v16 = vpop.f32.mrf.mxu0  ;;  %v937_v17 = vpop.f32.mrf.mxu1 }
 0x140   : > { %1849 = vst [vmem:[%s2877_s27 + $0x18] sm:$0xff] %v2174_v14  ;;  %1897 = vst [vmem:[%s2877_s27 + $0x138] sm:$0xff] %v2222_v15  ;;  %v1439_v20 = vadd.f32 %v2870_v47, %v817_v16  ;;  %v1511_v21 = vadd.f32 %v2870_v47, %v937_v17 }
 0x141   : > { %v821_v22 = vpop.f32.mrf.mxu0  ;;  %v941_v23 = vpop.f32.mrf.mxu1 }
 0x142   : > { %v2176_v24 = vpack.c.bf16 %v1439_v20, %v1438_v18  ;;  %v2224_v25 = vpack.c.bf16 %v1511_v21, %v1510_v19  ;;  %v1441_v28 = vadd.f32 %v2867_v46, %v821_v22  ;;  %v1513_v29 = vadd.f32 %v2867_v46, %v941_v23 }
 0x143   : > { %v823_v26 = vpop.f32.mrf.mxu0  ;;  %v943_v27 = vpop.f32.mrf.mxu1 }
 0x144   : > { %1851 = vst [vmem:[%s2877_s27 + $0x24] sm:$0xff] %v2176_v24  ;;  %1899 = vst [vmem:[%s2877_s27 + $0x144] sm:$0xff] %v2224_v25  ;;  %v1442_v30 = vadd.f32 %v2870_v47, %v823_v26  ;;  %v1514_v31 = vadd.f32 %v2870_v47, %v943_v27 }
 0x145   : > { %v825_v32 = vpop.f32.mrf.mxu0  ;;  %v945_v33 = vpop.f32.mrf.mxu1 }
 0x146   : > { %v2178_v34 = vpack.c.bf16 %v1442_v30, %v1441_v28  ;;  %v2226_v35 = vpack.c.bf16 %v1514_v31, %v1513_v29  ;;  %v1444_v38 = vadd.f32 %v2867_v46, %v825_v32  ;;  %v1516_v39 = vadd.f32 %v2867_v46, %v945_v33 }
 0x147   : > { %v827_v36 = vpop.f32.mrf.mxu0  ;;  %v947_v37 = vpop.f32.mrf.mxu1 }
 0x148   : > { %1853 = vst [vmem:[%s2877_s27 + $0x30] sm:$0xff] %v2178_v34  ;;  %1901 = vst [vmem:[%s2877_s27 + $0x150] sm:$0xff] %v2226_v35  ;;  %v1445_v40 = vadd.f32 %v2870_v47, %v827_v36  ;;  %v1517_v41 = vadd.f32 %v2870_v47, %v947_v37 }
 0x149   : > { %v831_v43 = vpop.f32.mrf.mxu0  ;;  %v951_v44 = vpop.f32.mrf.mxu1 }
 0x14a   : > { %v2180_v48 = vpack.c.bf16 %v1445_v40, %v1444_v38  ;;  %v2228_v49 = vpack.c.bf16 %v1517_v41, %v1516_v39  ;;  %v1447_v53 = vadd.f32 %v2867_v46, %v831_v43  ;;  %v1519_v54 = vadd.f32 %v2867_v46, %v951_v44 }
 0x14b   : > { %v833_v51 = vpop.f32.mrf.mxu0  ;;  %v953_v52 = vpop.f32.mrf.mxu1 }
 0x14c   : > { %1855 = vst [vmem:[%s2877_s27 + $0x3c] sm:$0xff] %v2180_v48  ;;  %1903 = vst [vmem:[%s2877_s27 + $0x15c] sm:$0xff] %v2228_v49  ;;  %v1448_v55 = vadd.f32 %v2870_v47, %v833_v51  ;;  %v1520_v56 = vadd.f32 %v2870_v47, %v953_v52 }
 0x14d   : > { %v835_v57 = vpop.f32.mrf.mxu0  ;;  %v955_v58 = vpop.f32.mrf.mxu1 }
 0x14e   : > { %v2182_v59 = vpack.c.bf16 %v1448_v55, %v1447_v53  ;;  %v2230_v60 = vpack.c.bf16 %v1520_v56, %v1519_v54  ;;  %v1450_v63 = vadd.f32 %v2867_v46, %v835_v57  ;;  %v1522_v0 = vadd.f32 %v2867_v46, %v955_v58 }
 0x14f   : > { %v837_v61 = vpop.f32.mrf.mxu0  ;;  %v957_v62 = vpop.f32.mrf.mxu1 }
 0x150   : > { %1857 = vst [vmem:[%s2877_s27 + $0x48] sm:$0xff] %v2182_v59  ;;  %1905 = vst [vmem:[%s2877_s27 + $0x168] sm:$0xff] %v2230_v60  ;;  %v1451_v1 = vadd.f32 %v2870_v47, %v837_v61  ;;  %v1523_v2 = vadd.f32 %v2870_v47, %v957_v62 }
 0x151   : > { %v841_v3 = vpop.f32.mrf.mxu0  ;;  %v2277_v4 = vpop.f32.mrf.mxu1 }
 0x152   : > { %v2184_v5 = vpack.c.bf16 %v1451_v1, %v1450_v63  ;;  %v2232_v45 = vpack.c.bf16 %v1523_v2, %v1522_v0  ;;  %v1437_v6 = vadd.f32 %v2277_v4, %v2917_v42  ;;  %v1453_v9 = vadd.f32 %v2867_v46, %v841_v3 }
 0x153   : > { %v843_v7 = vpop.f32.mrf.mxu0  ;;  %v994_v8 = vpop.f32.mrf.mxu1 }
 0x154   : > { %1859 = vst [vmem:[%s2877_s27 + $0x54] sm:$0xff] %v2184_v5  ;;  %1907 = vst [vmem:[%s2877_s27 + $0x174] sm:$0xff] %v2232_v45  ;;  %v2175_v10 = vpack.c.bf16 %v1437_v6, %v1437_v6  ;;  %v1454_v11 = vadd.f32 %v2870_v47, %v843_v7  ;;  %v1431_v12 = vadd.f32 %v2917_v42, %v994_v8 }
 0x155   : > { %v845_v13 = vpop.f32.mrf.mxu0  ;;  %v2278_v14 = vpop.f32.mrf.mxu1 }
 0x156   : > { %1850 = vst [vmem:[%s2877_s27 + $0x20] sm:$0xf] %v2175_v10  ;;  %v2186_v15 = vpack.c.bf16 %v1454_v11, %v1453_v9  ;;  %v2171_v16 = vpack.c.bf16 %v1431_v12, %v1431_v12  ;;  %v1440_v17 = vadd.f32 %v2278_v14, %v2917_v42  ;;  %v1456_v20 = vadd.f32 %v2867_v46, %v845_v13 }
 0x157   : > { %v847_v18 = vpop.f32.mrf.mxu0  ;;  %v997_v19 = vpop.f32.mrf.mxu1 }
 0x158   : > { %1861 = vst [vmem:[%s2877_s27 + $0x60] sm:$0xff] %v2186_v15  ;;  %1846 = vst [vmem:[%s2877_s27 + $0x8] sm:$0xf] %v2171_v16  ;;  %v2177_v21 = vpack.c.bf16 %v1440_v17, %v1440_v17  ;;  %v1457_v22 = vadd.f32 %v2870_v47, %v847_v18  ;;  %v1434_v23 = vadd.f32 %v2917_v42, %v997_v19 }
 0x159   : > { %v851_v24 = vpop.f32.mrf.mxu0  ;;  %v2281_v25 = vpop.f32.mrf.mxu1 }
 0x15a   : > { %1852 = vst [vmem:[%s2877_s27 + $0x2c] sm:$0xf] %v2177_v21  ;;  %v2188_v26 = vpack.c.bf16 %v1457_v22, %v1456_v20  ;;  %v2173_v27 = vpack.c.bf16 %v1434_v23, %v1434_v23  ;;  %v1449_v28 = vadd.f32 %v2281_v25, %v2917_v42  ;;  %v1459_v31 = vadd.f32 %v2867_v46, %v851_v24 }
 0x15b   : > { %v853_v29 = vpop.f32.mrf.mxu0  ;;  %v1010_v30 = vpop.f32.mrf.mxu1 }
 0x15c   : > { %1863 = vst [vmem:[%s2877_s27 + $0x6c] sm:$0xff] %v2188_v26  ;;  %1848 = vst [vmem:[%s2877_s27 + $0x14] sm:$0xf] %v2173_v27  ;;  %v2183_v32 = vpack.c.bf16 %v1449_v28, %v1449_v28  ;;  %v1460_v33 = vadd.f32 %v2870_v47, %v853_v29  ;;  %v1443_v34 = vadd.f32 %v2917_v42, %v1010_v30 }
 0x15d   : > { %v855_v35 = vpop.f32.mrf.mxu0  ;;  %v2282_v36 = vpop.f32.mrf.mxu1 }
 0x15e   : > { %1858 = vst [vmem:[%s2877_s27 + $0x50] sm:$0xf] %v2183_v32  ;;  %v2190_v37 = vpack.c.bf16 %v1460_v33, %v1459_v31  ;;  %v2179_v38 = vpack.c.bf16 %v1443_v34, %v1443_v34  ;;  %v1452_v39 = vadd.f32 %v2282_v36, %v2917_v42  ;;  %v1462_v43 = vadd.f32 %v2867_v46, %v855_v35 }
 0x15f   : > { %v857_v40 = vpop.f32.mrf.mxu0  ;;  %v1013_v41 = vpop.f32.mrf.mxu1 }
 0x160   : > { %1865 = vst [vmem:[%s2877_s27 + $0x78] sm:$0xff] %v2190_v37  ;;  %1854 = vst [vmem:[%s2877_s27 + $0x38] sm:$0xf] %v2179_v38  ;;  %v2185_v44 = vpack.c.bf16 %v1452_v39, %v1452_v39  ;;  %v1463_v48 = vadd.f32 %v2870_v47, %v857_v40  ;;  %v1446_v49 = vadd.f32 %v2917_v42, %v1013_v41 }
 0x161   : > { %v861_v50 = vpop.f32.mrf.mxu0  ;;  %v2285_v51 = vpop.f32.mrf.mxu1 }
 0x162   : > { %1860 = vst [vmem:[%s2877_s27 + $0x5c] sm:$0xf] %v2185_v44  ;;  %v2192_v52 = vpack.c.bf16 %v1463_v48, %v1462_v43  ;;  %v2181_v53 = vpack.c.bf16 %v1446_v49, %v1446_v49  ;;  %v1461_v54 = vadd.f32 %v2285_v51, %v2917_v42  ;;  %v1465_v57 = vadd.f32 %v2867_v46, %v861_v50 }
 0x163   : > { %v863_v55 = vpop.f32.mrf.mxu0  ;;  %v1026_v56 = vpop.f32.mrf.mxu1 }
 0x164   : > { %1867 = vst [vmem:[%s2877_s27 + $0x84] sm:$0xff] %v2192_v52  ;;  %1856 = vst [vmem:[%s2877_s27 + $0x44] sm:$0xf] %v2181_v53  ;;  %v2191_v58 = vpack.c.bf16 %v1461_v54, %v1461_v54  ;;  %v1466_v59 = vadd.f32 %v2870_v47, %v863_v55  ;;  %v1455_v60 = vadd.f32 %v2917_v42, %v1026_v56 }
 0x165   : > { %v865_v61 = vpop.f32.mrf.mxu0  ;;  %v2286_v62 = vpop.f32.mrf.mxu1 }
 0x166   : > { %1866 = vst [vmem:[%s2877_s27 + $0x80] sm:$0xf] %v2191_v58  ;;  %v2194_v63 = vpack.c.bf16 %v1466_v59, %v1465_v57  ;;  %v2187_v0 = vpack.c.bf16 %v1455_v60, %v1455_v60  ;;  %v1464_v1 = vadd.f32 %v2286_v62, %v2917_v42  ;;  %v1468_v4 = vadd.f32 %v2867_v46, %v865_v61 }
 0x167   : > { %v867_v2 = vpop.f32.mrf.mxu0  ;;  %v1029_v3 = vpop.f32.mrf.mxu1 }
 0x168   : > { %1869 = vst [vmem:[%s2877_s27 + $0x90] sm:$0xff] %v2194_v63  ;;  %1862 = vst [vmem:[%s2877_s27 + $0x68] sm:$0xf] %v2187_v0  ;;  %v2193_v5 = vpack.c.bf16 %v1464_v1, %v1464_v1  ;;  %v1469_v45 = vadd.f32 %v2870_v47, %v867_v2  ;;  %v1458_v6 = vadd.f32 %v2917_v42, %v1029_v3 }
 0x169   : > { %v871_v7 = vpop.f32.mrf.mxu0  ;;  %v2289_v8 = vpop.f32.mrf.mxu1 }
 0x16a   : > { %1868 = vst [vmem:[%s2877_s27 + $0x8c] sm:$0xf] %v2193_v5  ;;  %v2196_v9 = vpack.c.bf16 %v1469_v45, %v1468_v4  ;;  %v2189_v10 = vpack.c.bf16 %v1458_v6, %v1458_v6  ;;  %v1473_v11 = vadd.f32 %v2289_v8, %v2917_v42  ;;  %v1471_v14 = vadd.f32 %v2867_v46, %v871_v7 }
 0x16b   : > { %v873_v12 = vpop.f32.mrf.mxu0  ;;  %v1042_v13 = vpop.f32.mrf.mxu1 }
 0x16c   : > { %1871 = vst [vmem:[%s2877_s27 + $0x9c] sm:$0xff] %v2196_v9  ;;  %1864 = vst [vmem:[%s2877_s27 + $0x74] sm:$0xf] %v2189_v10  ;;  %v2199_v15 = vpack.c.bf16 %v1473_v11, %v1473_v11  ;;  %v1472_v16 = vadd.f32 %v2870_v47, %v873_v12  ;;  %v1467_v17 = vadd.f32 %v2917_v42, %v1042_v13 }
 0x16d   : > { %v875_v18 = vpop.f32.mrf.mxu0  ;;  %v2290_v19 = vpop.f32.mrf.mxu1 }
 0x16e   : > { %1874 = vst [vmem:[%s2877_s27 + $0xb0] sm:$0xf] %v2199_v15  ;;  %v2198_v20 = vpack.c.bf16 %v1472_v16, %v1471_v14  ;;  %v2195_v21 = vpack.c.bf16 %v1467_v17, %v1467_v17  ;;  %v1476_v22 = vadd.f32 %v2290_v19, %v2917_v42  ;;  %v1474_v25 = vadd.f32 %v2867_v46, %v875_v18 }
 0x16f   : > { %v877_v23 = vpop.f32.mrf.mxu0  ;;  %v1045_v24 = vpop.f32.mrf.mxu1 }
 0x170   : > { %1873 = vst [vmem:[%s2877_s27 + $0xa8] sm:$0xff] %v2198_v20  ;;  %1870 = vst [vmem:[%s2877_s27 + $0x98] sm:$0xf] %v2195_v21  ;;  %v2201_v26 = vpack.c.bf16 %v1476_v22, %v1476_v22  ;;  %v1475_v27 = vadd.f32 %v2870_v47, %v877_v23  ;;  %v1470_v28 = vadd.f32 %v2917_v42, %v1045_v24 }
 0x171   : > { %v881_v29 = vpop.f32.mrf.mxu0  ;;  %v2293_v30 = vpop.f32.mrf.mxu1 }
 0x172   : > { %1876 = vst [vmem:[%s2877_s27 + $0xbc] sm:$0xf] %v2201_v26  ;;  %v2200_v31 = vpack.c.bf16 %v1475_v27, %v1474_v25  ;;  %v2197_v32 = vpack.c.bf16 %v1470_v28, %v1470_v28  ;;  %v1485_v33 = vadd.f32 %v2293_v30, %v2917_v42  ;;  %v1477_v36 = vadd.f32 %v2867_v46, %v881_v29 }
 0x173   : > { %v883_v34 = vpop.f32.mrf.mxu0  ;;  %v1058_v35 = vpop.f32.mrf.mxu1 }
 0x174   : > { %1875 = vst [vmem:[%s2877_s27 + $0xb4] sm:$0xff] %v2200_v31  ;;  %1872 = vst [vmem:[%s2877_s27 + $0xa4] sm:$0xf] %v2197_v32  ;;  %v2207_v37 = vpack.c.bf16 %v1485_v33, %v1485_v33  ;;  %v1478_v38 = vadd.f32 %v2870_v47, %v883_v34  ;;  %v1479_v39 = vadd.f32 %v2917_v42, %v1058_v35 }
 0x175   : > { %v885_v40 = vpop.f32.mrf.mxu0  ;;  %v2294_v41 = vpop.f32.mrf.mxu1 }
 0x176   : > { %1882 = vst [vmem:[%s2877_s27 + $0xe0] sm:$0xf] %v2207_v37  ;;  %v2202_v43 = vpack.c.bf16 %v1478_v38, %v1477_v36  ;;  %v2203_v44 = vpack.c.bf16 %v1479_v39, %v1479_v39  ;;  %v1488_v48 = vadd.f32 %v2294_v41, %v2917_v42  ;;  %v1480_v51 = vadd.f32 %v2867_v46, %v885_v40 }
 0x177   : > { %v887_v49 = vpop.f32.mrf.mxu0  ;;  %v1061_v50 = vpop.f32.mrf.mxu1 }
 0x178   : > { %1877 = vst [vmem:[%s2877_s27 + $0xc0] sm:$0xff] %v2202_v43  ;;  %1878 = vst [vmem:[%s2877_s27 + $0xc8] sm:$0xf] %v2203_v44  ;;  %v2209_v52 = vpack.c.bf16 %v1488_v48, %v1488_v48  ;;  %v1481_v53 = vadd.f32 %v2870_v47, %v887_v49  ;;  %v1482_v54 = vadd.f32 %v2917_v42, %v1061_v50 }
 0x179   : > { %v891_v55 = vpop.f32.mrf.mxu0  ;;  %v2297_v56 = vpop.f32.mrf.mxu1 }
 0x17a   : > { %1884 = vst [vmem:[%s2877_s27 + $0xec] sm:$0xf] %v2209_v52  ;;  %v2204_v57 = vpack.c.bf16 %v1481_v53, %v1480_v51  ;;  %v2205_v58 = vpack.c.bf16 %v1482_v54, %v1482_v54  ;;  %v1497_v59 = vadd.f32 %v2297_v56, %v2917_v42  ;;  %v1483_v62 = vadd.f32 %v2867_v46, %v891_v55 }
 0x17b   : > { %v893_v60 = vpop.f32.mrf.mxu0  ;;  %v1074_v61 = vpop.f32.mrf.mxu1 }
 0x17c   : > { %1879 = vst [vmem:[%s2877_s27 + $0xcc] sm:$0xff] %v2204_v57  ;;  %1880 = vst [vmem:[%s2877_s27 + $0xd4] sm:$0xf] %v2205_v58  ;;  %v2215_v63 = vpack.c.bf16 %v1497_v59, %v1497_v59  ;;  %v1484_v0 = vadd.f32 %v2870_v47, %v893_v60  ;;  %v1491_v1 = vadd.f32 %v2917_v42, %v1074_v61 }
 0x17d   : > { %v895_v2 = vpop.f32.mrf.mxu0  ;;  %v2298_v3 = vpop.f32.mrf.mxu1 }
 0x17e   : > { %1890 = vst [vmem:[%s2877_s27 + $0x110] sm:$0xf] %v2215_v63  ;;  %v2206_v4 = vpack.c.bf16 %v1484_v0, %v1483_v62  ;;  %v2211_v5 = vpack.c.bf16 %v1491_v1, %v1491_v1  ;;  %v1500_v45 = vadd.f32 %v2298_v3, %v2917_v42  ;;  %v1486_v8 = vadd.f32 %v2867_v46, %v895_v2 }
 0x17f   : > { %v897_v6 = vpop.f32.mrf.mxu0  ;;  %v1077_v7 = vpop.f32.mrf.mxu1 }
 0x180   : > { %1881 = vst [vmem:[%s2877_s27 + $0xd8] sm:$0xff] %v2206_v4  ;;  %1886 = vst [vmem:[%s2877_s27 + $0xf8] sm:$0xf] %v2211_v5  ;;  %v2217_v9 = vpack.c.bf16 %v1500_v45, %v1500_v45  ;;  %v1487_v10 = vadd.f32 %v2870_v47, %v897_v6  ;;  %v1494_v11 = vadd.f32 %v2917_v42, %v1077_v7 }
 0x181   : > { %v901_v12 = vpop.f32.mrf.mxu0  ;;  %v2301_v13 = vpop.f32.mrf.mxu1 }
 0x182   : > { %1892 = vst [vmem:[%s2877_s27 + $0x11c] sm:$0xf] %v2217_v9  ;;  %v2208_v14 = vpack.c.bf16 %v1487_v10, %v1486_v8  ;;  %v2213_v15 = vpack.c.bf16 %v1494_v11, %v1494_v11  ;;  %v1509_v16 = vadd.f32 %v2301_v13, %v2917_v42  ;;  %v1489_v19 = vadd.f32 %v2867_v46, %v901_v12 }
 0x183   : > { %v903_v17 = vpop.f32.mrf.mxu0  ;;  %v1090_v18 = vpop.f32.mrf.mxu1 }
 0x184   : > { %1883 = vst [vmem:[%s2877_s27 + $0xe4] sm:$0xff] %v2208_v14  ;;  %1888 = vst [vmem:[%s2877_s27 + $0x104] sm:$0xf] %v2213_v15  ;;  %v2223_v20 = vpack.c.bf16 %v1509_v16, %v1509_v16  ;;  %v1490_v21 = vadd.f32 %v2870_v47, %v903_v17  ;;  %v1503_v22 = vadd.f32 %v2917_v42, %v1090_v18 }
 0x185   : > { %v905_v23 = vpop.f32.mrf.mxu0  ;;  %v2302_v24 = vpop.f32.mrf.mxu1 }
 0x186   : > { %1898 = vst [vmem:[%s2877_s27 + $0x140] sm:$0xf] %v2223_v20  ;;  %v2210_v25 = vpack.c.bf16 %v1490_v21, %v1489_v19  ;;  %v2219_v26 = vpack.c.bf16 %v1503_v22, %v1503_v22  ;;  %v1512_v27 = vadd.f32 %v2302_v24, %v2917_v42  ;;  %v1492_v30 = vadd.f32 %v2867_v46, %v905_v23 }
 0x187   : > { %v907_v28 = vpop.f32.mrf.mxu0  ;;  %v1093_v29 = vpop.f32.mrf.mxu1 }
 0x188   : > { %1885 = vst [vmem:[%s2877_s27 + $0xf0] sm:$0xff] %v2210_v25  ;;  %1894 = vst [vmem:[%s2877_s27 + $0x128] sm:$0xf] %v2219_v26  ;;  %v2225_v31 = vpack.c.bf16 %v1512_v27, %v1512_v27  ;;  %v1493_v32 = vadd.f32 %v2870_v47, %v907_v28  ;;  %v1506_v33 = vadd.f32 %v2917_v42, %v1093_v29 }
 0x189   : > { %v911_v34 = vpop.f32.mrf.mxu0  ;;  %v2305_v35 = vpop.f32.mrf.mxu1 }
 0x18a   : > { %1900 = vst [vmem:[%s2877_s27 + $0x14c] sm:$0xf] %v2225_v31  ;;  %v2212_v36 = vpack.c.bf16 %v1493_v32, %v1492_v30  ;;  %v2221_v37 = vpack.c.bf16 %v1506_v33, %v1506_v33  ;;  %v1521_v38 = vadd.f32 %v2305_v35, %v2917_v42  ;;  %v1495_v41 = vadd.f32 %v2867_v46, %v911_v34 }
 0x18b   : > { %v913_v39 = vpop.f32.mrf.mxu0  ;;  %v1106_v40 = vpop.f32.mrf.mxu1 }
 0x18c   : > { %1887 = vst [vmem:[%s2877_s27 + $0xfc] sm:$0xff] %v2212_v36  ;;  %1896 = vst [vmem:[%s2877_s27 + $0x134] sm:$0xf] %v2221_v37  ;;  %v2231_v43 = vpack.c.bf16 %v1521_v38, %v1521_v38  ;;  %v1496_v44 = vadd.f32 %v2870_v47, %v913_v39  ;;  %v1515_v48 = vadd.f32 %v2917_v42, %v1106_v40 }
 0x18d   : > { %v915_v49 = vpop.f32.mrf.mxu0  ;;  %v2306_v50 = vpop.f32.mrf.mxu1 }
 0x18e   : > { %1906 = vst [vmem:[%s2877_s27 + $0x170] sm:$0xf] %v2231_v43  ;;  %v2214_v51 = vpack.c.bf16 %v1496_v44, %v1495_v41  ;;  %v2227_v52 = vpack.c.bf16 %v1515_v48, %v1515_v48  ;;  %v1524_v53 = vadd.f32 %v2306_v50, %v2917_v42  ;;  %v1498_v56 = vadd.f32 %v2867_v46, %v915_v49 }
 0x18f   : > { %v917_v54 = vpop.f32.mrf.mxu0  ;;  %v1109_v55 = vpop.f32.mrf.mxu1 }
 0x190   : > { %1889 = vst [vmem:[%s2877_s27 + $0x108] sm:$0xff] %v2214_v51  ;;  %1902 = vst [vmem:[%s2877_s27 + $0x158] sm:$0xf] %v2227_v52  ;;  %v2233_v57 = vpack.c.bf16 %v1524_v53, %v1524_v53  ;;  %v1499_v58 = vadd.f32 %v2870_v47, %v917_v54  ;;  %v1518_v59 = vadd.f32 %v2917_v42, %v1109_v55 }
 0x192   : > { %1908 = vst [vmem:[%s2877_s27 + $0x17c] sm:$0xf] %v2233_v57  ;;  %v2216_v60 = vpack.c.bf16 %v1499_v58, %v1498_v56  ;;  %v2229_v61 = vpack.c.bf16 %v1518_v59, %v1518_v59 }
 0x194   : > { %1891 = vst [vmem:[%s2877_s27 + $0x114] sm:$0xff] %v2216_v60  ;;  %1904 = vst [vmem:[%s2877_s27 + $0x164] sm:$0xf] %v2229_v61 }
 0x195   : > { %2558 = shalt.err (!%p2555_p6)
}
 0x196   : > { %s2559_s29 = scalar_lea.hbm %s3041_s4, 6144  ;;  %s2563_s5 = scalar_lea.hbm %s3097_s3, 12288 }
 0x197   : > { %p2560_p8 = scmp.ne.s32.totalorder %s3041_s4, %s2559_s29  ;;  %p2564_p11 = scmp.lt.s32.totalorder %s3041_s4, %s3097_s3 }
 0x198   : > { %p2565_p12 = scmp.lt.s32.totalorder %s2563_s5, %s2559_s29 }
 0x199   : > { %p2561_p5 = pnand %p2560_p8, %p3110_p10 }
 0x19a   : > { %p2566_p13 = por %p2565_p12, %p2564_p11 }
 0x19b   : > { %p2562_p9 = pneg %p2561_p5 }
 0x19d   : > { %p2567_p7 = pnand %p2566_p13, %p2562_p9 }
 0x19f   : > { %2570 = shalt.err (!%p2567_p7)
}
 0x1a0   : > { %s2641_s27 = smov 192   ;;  %s2642_s10 = smov 384  }
 0x1a1   : > { %s2643_s15 = smov 12  }
 0x1a2   : > { %2336 = dma.vmem_to_hbm [thread:$0]  (%p3110_p10), %s3043_s19, 6144, %s3041_s4, %s1910_s8, %s2641_s27, %s2642_s10, %s2643_s15  }
 0x1a3 PF: > { %s1941_s6 = sand.u32 1, %s2609_s12   ;;  %p3111_p2 = scmp.ne.s32.totalorder %s3104_s26, 0 }
 0x1a4   : > { %p3112_p1 = scmp.ge.s32.totalorder %s2629_s17, 2  ;;  %s1942_s9 = scalar_lea.sflag [#allocation5], %s1941_s6 }
 0x1a6   : > { %p2350_p0 = pnand %p3112_p1, %p3111_p2 }
 0x1a8   : > { %p2351_p3 = pneg %p2350_p0 }
 0x1aa   : > { %2604 = dma.done.wait (%p2351_p3), %s1942_s9, 6144  }
 0x1ab   : > { %2606 = vsyncadd (%p2351_p3), %s1942_s9, 4294961152  ;;  %s20_s17 = sadd.s32 1, %s2629_s17   ;;  %s3113_s12 = smov %s2613_s13 }
 0x1ac   : > { %p17_p4 = scmp.ge.s32.totalorder %s20_s17, 4   ;;  %s3114_s13 = smov %s2617_s14 }
 0x1ad   : > { %s3115_s14 = smov %s2712_s24  ;;  %s3116_s15 = smov %s2625_s16 }
 0x1ae   : > { %s3117_s16 = smov %s3119_s18  ;;  %19 = sbr.rel (!%p17_p4) target bundleno = 7 (0x7), region = 102 }
 0x1b3   :  { %1947 = vsyncpa [#allocation4], 1 }
 0x1b4   :  { %1949 = vsyncpa [#allocation4 + $0x1], 1 }
 0x1b5   :  { %1950 = vsyncpa [#allocation7], 1 }
 0x1b6   :  { %1952 = vsyncpa [#allocation7 + $0x1], 1 }
 0x1b7   :  { %1953 = vsyncpa [#allocation5], 1 }
 0x1b8   :  { %1955 = vsyncpa [#allocation5 + $0x1], 1 }

</bundles_post_ra>
